<compile_context>
chip_gen: v7x
topology: tpu7x:2x2x1
jax: 0.10.0
libtpu: 0.0.40
codegen_flags: <defaults>
</compile_context>

<pallas_src>
import functools

import jax
import jax.numpy as jnp
from jax.experimental import pallas as pl
from jax.experimental.pallas import tpu as pltpu  # noqa: F401  (kept for TPU-specific tuning hooks)


# ---------------------------------------------------------------------------
# Helpers
# ---------------------------------------------------------------------------
def _round_up(n, m):
    return ((n + m - 1) // m) * m


def _full_spec(shape):
    # Whole array as a single block (grid=()), index_map takes no args.
    return pl.BlockSpec(shape, lambda: tuple(0 for _ in shape))


# ---------------------------------------------------------------------------
# Fused kernel: all hidden layers + Gaussian head in one body.
#   x_ref   : (batch_p, x_dim)            unpadded lanes (full-array block)
#   w_ref   : (rows, total_cols)          all weights, zero-padded, column-packed
#   b_ref   : (1, total_cols)             all biases, zero-padded, column-packed
#   eps_ref : (batch_p, z_pad)            reparameterization noise (lane-padded)
#   out_ref : (batch_p, 3*z_pad)          [ z | mu | log_var ] lane-dense slab
# Per-layer weights are static slices of the slab (zero runtime cost).
# ---------------------------------------------------------------------------
def _fused_encoder_kernel(x_ref, w_ref, b_ref, eps_ref, out_ref,
                          *, n_hidden, col_offsets, z_pad):
    h = x_ref[...]
    for i in range(n_hidden):
        c0, c1 = col_offsets[i], col_offsets[i + 1]
        k = h.shape[1]                                   # static fan-in of this layer
        w = w_ref[0:k, c0:c1]
        h = jnp.dot(h, w, preferred_element_type=jnp.float32) + b_ref[:, c0:c1]
        if i < n_hidden - 1:                             # ReLU after all but the last hidden layer
            h = jnp.maximum(h, 0.0)

    # Fused mu/log_var head: one matmul over [h_last, 2*z_pad], split on a
    # 128-aligned lane boundary.
    c0, c1 = col_offsets[n_hidden], col_offsets[n_hidden + 1]
    k = h.shape[1]
    head = jnp.dot(h, w_ref[0:k, c0:c1],
                   preferred_element_type=jnp.float32) + b_ref[:, c0:c1]
    mu = head[:, :z_pad]
    log_var = head[:, z_pad:]
    z = mu + eps_ref[...] * jnp.exp(0.5 * log_var)

    # Single lane-dense output slab, 128-aligned unmasked stores.
    out_ref[:, 0:z_pad] = z.astype(out_ref.dtype)
    out_ref[:, z_pad:2 * z_pad] = mu.astype(out_ref.dtype)
    out_ref[:, 2 * z_pad:3 * z_pad] = log_var.astype(out_ref.dtype)


# ---------------------------------------------------------------------------
# Parameters
# ---------------------------------------------------------------------------
def init_encoder_params(key, dims):
    """dims = [x_dim, [h1, h2, ...], z_dim]. PyTorch-Linear-style uniform init.

    Weights stored [in_features, out_features] so the kernel computes y = x@W + b
    (semantically identical to nn.Linear's x @ W.T with W stored [out, in]).
    """
    x_dim, h_dims, z_dim = dims
    neurons = [x_dim, *h_dims]
    params = {"hidden": []}
    for i in range(1, len(neurons)):
        key, kw, kb = jax.random.split(key, 3)
        fan_in, fan_out = neurons[i - 1], neurons[i]
        bound = 1.0 / (fan_in ** 0.5)
        w = jax.random.uniform(kw, (fan_in, fan_out), jnp.float32, -bound, bound)
        b = jax.random.uniform(kb, (fan_out,), jnp.float32, -bound, bound)
        params["hidden"].append((w, b))
    h_last = h_dims[-1]
    bound = 1.0 / (h_last ** 0.5)
    key, k1, k2, k3, k4 = jax.random.split(key, 5)
    params["mu"] = (
        jax.random.uniform(k1, (h_last, z_dim), jnp.float32, -bound, bound),
        jax.random.uniform(k2, (z_dim,), jnp.float32, -bound, bound),
    )
    params["log_var"] = (
        jax.random.uniform(k3, (h_last, z_dim), jnp.float32, -bound, bound),
        jax.random.uniform(k4, (z_dim,), jnp.float32, -bound, bound),
    )
    return params


def pad_encoder_params(params):
    """Pack all weights into one zero-padded [rows, cols] slab and all biases into
    one [1, cols] slab (lane widths multiples of 128); mu/log_var become one fused
    head block of width 2*z_pad.  Done once, not per call.

    Returns (arrays_dict, static_cfg_dict).
    """
    hidden = params["hidden"]
    w_mu, b_mu = params["mu"]
    w_lv, b_lv = params["log_var"]

    x_dim = hidden[0][0].shape[0]
    h_dims = [w.shape[1] for w, _ in hidden]
    z_dim = w_mu.shape[1]

    h_pads = [_round_up(h, 128) for h in h_dims]
    zp = _round_up(z_dim, 128)
    rows = _round_up(max([x_dim] + h_pads), 8)

    col_widths = h_pads + [2 * zp]
    col_offsets = [0]
    for w in col_widths:
        col_offsets.append(col_offsets[-1] + w)
    total_cols = col_offsets[-1]

    w_slab = jnp.zeros((rows, total_cols), jnp.float32)
    b_slab = jnp.zeros((1, total_cols), jnp.float32)
    for i, (w, b) in enumerate(hidden):
        fi, fo = w.shape
        c0 = col_offsets[i]
        w_slab = w_slab.at[:fi, c0:c0 + fo].set(w)
        b_slab = b_slab.at[0, c0:c0 + fo].set(b)

    c0 = col_offsets[len(hidden)]
    h_last = w_mu.shape[0]
    w_slab = w_slab.at[:h_last, c0:c0 + z_dim].set(w_mu)
    w_slab = w_slab.at[:h_last, c0 + zp:c0 + zp + z_dim].set(w_lv)
    b_slab = b_slab.at[0, c0:c0 + z_dim].set(b_mu)
    b_slab = b_slab.at[0, c0 + zp:c0 + zp + z_dim].set(b_lv)

    cfg = {
        "x_dim": x_dim,
        "z_dim": z_dim,
        "z_pad": zp,
        "n_hidden": len(hidden),
        "h_pads": tuple(h_pads),
        "col_offsets": tuple(col_offsets),
    }
    return {"w_slab": w_slab, "b_slab": b_slab}, cfg


# ---------------------------------------------------------------------------
# Forward: one jitted wrapper around a single pallas_call.
# ---------------------------------------------------------------------------
def make_encoder_forward(cfg):
    x_dim = cfg["x_dim"]
    z_dim = cfg["z_dim"]
    zp = cfg["z_pad"]
    n_hidden = cfg["n_hidden"]
    h_pads = cfg["h_pads"]
    col_offsets = cfg["col_offsets"]

    kernel = functools.partial(
        _fused_encoder_kernel,
        n_hidden=n_hidden, col_offsets=col_offsets, z_pad=zp)

    @jax.jit
    def fwd(w_slab, b_slab, x, eps):
        """x: (batch, x_dim) f32.  eps: (batch, z_pad) f32 (only the first z_dim
        columns contribute to the returned z).  Returns (z, mu, log_var), each
        (batch, z_dim)."""
        batch = x.shape[0]
        batch_p = _round_up(batch, 8)
        if batch_p != batch:  # only traced when the caller's batch isn't sublane-aligned
            x = jnp.zeros((batch_p, x_dim), x.dtype).at[:batch].set(x)
            eps = jnp.zeros((batch_p, zp), eps.dtype).at[:batch].set(eps)

        flops = 2 * batch_p * (
            x_dim * h_pads[0]
            + sum(h_pads[i - 1] * h_pads[i] for i in range(1, n_hidden))
            + h_pads[-1] * 2 * zp)
        bytes_accessed = 4 * (x.size + w_slab.size + b_slab.size
                              + eps.size + batch_p * 3 * zp)

        out = pl.pallas_call(
            kernel,
            out_shape=jax.ShapeDtypeStruct((batch_p, 3 * zp), jnp.float32),
            in_specs=[_full_spec(x.shape),
                      _full_spec(w_slab.shape),
                      _full_spec(b_slab.shape),
                      _full_spec(eps.shape)],
            out_specs=_full_spec((batch_p, 3 * zp)),
            cost_estimate=pl.CostEstimate(
                flops=flops,
                transcendentals=batch_p * zp,
                bytes_accessed=bytes_accessed),
        )(x, w_slab, b_slab, eps)

        z = out[:batch, 0:z_dim]
        mu = out[:batch, zp:zp + z_dim]
        log_var = out[:batch, 2 * zp:2 * zp + z_dim]
        return z, mu, log_var

    return fwd


# ---------------------------------------------------------------------------
# Plain-JAX reference (uses the UNpadded params; HIGHEST precision so the f32
# comparison against the MXU kernel is meaningful).
# ---------------------------------------------------------------------------
def encoder_forward_ref(params, x, eps):
    hp = jax.lax.Precision.HIGHEST
    n_hidden = len(params["hidden"])
    h = x
    for i, (w, b) in enumerate(params["hidden"]):
        h = jnp.dot(h, w, precision=hp) + b
        if i < n_hidden - 1:
            h = jnp.maximum(h, 0.0)
    w_mu, b_mu = params["mu"]
    w_lv, b_lv = params["log_var"]
    mu = jnp.dot(h, w_mu, precision=hp) + b_mu
    log_var = jnp.dot(h, w_lv, precision=hp) + b_lv
    z = mu + eps * jnp.exp(0.5 * log_var)
    return z, mu, log_var


# ---------------------------------------------------------------------------
if __name__ == "__main__":
    # dims = [x_dim, [hidden_dims], z_dim]
    dims = [32, [64, 48], 16]
    batch = 8

    key = jax.random.PRNGKey(0)
    kp, kx, keps = jax.random.split(key, 3)

    params = init_encoder_params(kp, dims)
    slabs, cfg = pad_encoder_params(params)
    encoder_forward = make_encoder_forward(cfg)

    x = jax.random.normal(kx, (batch, dims[0]), jnp.float32)
    # Deterministic reparameterization noise (stands in for torch.randn_like).
    # Generated already lane-padded so the jitted wrapper does NO per-call padding.
    eps_full = jax.random.normal(keps, (batch, cfg["z_pad"]), jnp.float32)

    z, mu, log_var = encoder_forward(slabs["w_slab"], slabs["b_slab"], x, eps_full)
    jax.block_until_ready((z, mu, log_var))

    z_r, mu_r, lv_r = encoder_forward_ref(params, x, eps_full[:, :dims[2]])

    assert z.shape == (batch, dims[2])
    assert mu.shape == (batch, dims[2])
    assert log_var.shape == (batch, dims[2])
    # Tolerance accounts for MXU f32 matmul emulation vs the HIGHEST-precision XLA reference.
    assert jnp.allclose(mu, mu_r, atol=1e-2, rtol=1e-2)
    assert jnp.allclose(log_var, lv_r, atol=1e-2, rtol=1e-2)
    assert jnp.allclose(z, z_r, atol=1e-2, rtol=1e-2)

    print("KERNEL_OK")
</pallas_src>

<mosaic_0001>
module attributes {stable_mosaic.version = 11 : i64} {
  func.func @_fused_encoder_kernel(%arg0: memref<8x32xf32, #tpu.memory_space<vmem>>, %arg1: memref<128x512xf32, #tpu.memory_space<vmem>>, %arg2: memref<1x512xf32, #tpu.memory_space<vmem>>, %arg3: memref<8x128xf32, #tpu.memory_space<vmem>>, %arg4: memref<8x384xf32, #tpu.memory_space<vmem>>) attributes {dimension_semantics = [], scalar_prefetch = 0 : i64, scratch_operands = 0 : i64, tpu.core_type = #tpu.core_type<tc>} {
    %c0 = arith.constant 0 : index
    %c0_0 = arith.constant 0 : index
    %0 = vector.load %arg0[%c0, %c0_0] : memref<8x32xf32, #tpu.memory_space<vmem>>, vector<8x32xf32>
    %c0_1 = arith.constant 0 : index
    %c0_2 = arith.constant 0 : index
    %1 = vector.load %arg1[%c0_1, %c0_2] : memref<128x512xf32, #tpu.memory_space<vmem>>, vector<32x128xf32>
    %cst = arith.constant dense<0.000000e+00> : vector<8x128xf32>
    %2 = tpu.matmul %0, %1, %cst {dimension_numbers = #tpu.dot_dimension_numbers<[1], [0], [0], [1], [0, 0, 1, 1], [], []>} : vector<8x32xf32>, vector<32x128xf32>, vector<8x128xf32> -> vector<8x128xf32>
    %c0_3 = arith.constant 0 : index
    %c0_4 = arith.constant 0 : index
    %3 = vector.load %arg2[%c0_3, %c0_4] : memref<1x512xf32, #tpu.memory_space<vmem>>, vector<1x128xf32>
    %4 = vector.broadcast %3 : vector<1x128xf32> to vector<8x128xf32>
    %5 = arith.addf %2, %4 : vector<8x128xf32>
    %cst_5 = arith.constant 0.000000e+00 : f32
    %6 = vector.broadcast %cst_5 : f32 to vector<8x128xf32>
    %7 = arith.maximumf %5, %6 : vector<8x128xf32>
    %c0_6 = arith.constant 0 : index
    %c128 = arith.constant 128 : index
    %8 = vector.load %arg1[%c0_6, %c128] : memref<128x512xf32, #tpu.memory_space<vmem>>, vector<128x128xf32>
    %cst_7 = arith.constant dense<0.000000e+00> : vector<8x128xf32>
    %9 = tpu.matmul %7, %8, %cst_7 {dimension_numbers = #tpu.dot_dimension_numbers<[1], [0], [0], [1], [0, 0, 1, 1], [], []>} : vector<8x128xf32>, vector<128x128xf32>, vector<8x128xf32> -> vector<8x128xf32>
    %c0_8 = arith.constant 0 : index
    %c128_9 = arith.constant 128 : index
    %10 = vector.load %arg2[%c0_8, %c128_9] : memref<1x512xf32, #tpu.memory_space<vmem>>, vector<1x128xf32>
    %11 = vector.broadcast %10 : vector<1x128xf32> to vector<8x128xf32>
    %12 = arith.addf %9, %11 : vector<8x128xf32>
    %c0_10 = arith.constant 0 : index
    %c256 = arith.constant 256 : index
    %13 = vector.load %arg1[%c0_10, %c256] : memref<128x512xf32, #tpu.memory_space<vmem>>, vector<128x256xf32>
    %cst_11 = arith.constant dense<0.000000e+00> : vector<8x256xf32>
    %14 = tpu.matmul %12, %13, %cst_11 {dimension_numbers = #tpu.dot_dimension_numbers<[1], [0], [0], [1], [0, 0, 1, 1], [], []>} : vector<8x128xf32>, vector<128x256xf32>, vector<8x256xf32> -> vector<8x256xf32>
    %c0_12 = arith.constant 0 : index
    %c256_13 = arith.constant 256 : index
    %15 = vector.load %arg2[%c0_12, %c256_13] : memref<1x512xf32, #tpu.memory_space<vmem>>, vector<1x256xf32>
    %16 = vector.broadcast %15 : vector<1x256xf32> to vector<8x256xf32>
    %17 = arith.addf %14, %16 : vector<8x256xf32>
    %18 = vector.extract_strided_slice %17 {offsets = [0, 0], sizes = [8, 128], strides = [1, 1]} : vector<8x256xf32> to vector<8x128xf32>
    %19 = vector.extract_strided_slice %17 {offsets = [0, 128], sizes = [8, 128], strides = [1, 1]} : vector<8x256xf32> to vector<8x128xf32>
    %c0_14 = arith.constant 0 : index
    %c0_15 = arith.constant 0 : index
    %20 = vector.load %arg3[%c0_14, %c0_15] : memref<8x128xf32, #tpu.memory_space<vmem>>, vector<8x128xf32>
    %cst_16 = arith.constant 5.000000e-01 : f32
    %21 = vector.broadcast %cst_16 : f32 to vector<8x128xf32>
    %22 = arith.mulf %21, %19 : vector<8x128xf32>
    %23 = math.exp %22 : vector<8x128xf32>
    %24 = arith.mulf %20, %23 : vector<8x128xf32>
    %25 = arith.addf %18, %24 : vector<8x128xf32>
    %c0_17 = arith.constant 0 : index
    %c0_18 = arith.constant 0 : index
    %26 = vector.load %arg4[%c0_17, %c0_18] : memref<8x384xf32, #tpu.memory_space<vmem>>, vector<8x128xf32>
    tpu.vector_store %arg4[%c0_17, %c0_18], %25 {strides = array<i32>} : memref<8x384xf32, #tpu.memory_space<vmem>>, vector<8x128xf32>,
    %c0_19 = arith.constant 0 : index
    %c128_20 = arith.constant 128 : index
    %27 = vector.load %arg4[%c0_19, %c128_20] : memref<8x384xf32, #tpu.memory_space<vmem>>, vector<8x128xf32>
    tpu.vector_store %arg4[%c0_19, %c128_20], %18 {strides = array<i32>} : memref<8x384xf32, #tpu.memory_space<vmem>>, vector<8x128xf32>,
    %c0_21 = arith.constant 0 : index
    %c256_22 = arith.constant 256 : index
    %28 = vector.load %arg4[%c0_21, %c256_22] : memref<8x384xf32, #tpu.memory_space<vmem>>, vector<8x128xf32>
    tpu.vector_store %arg4[%c0_21, %c256_22], %19 {strides = array<i32>} : memref<8x384xf32, #tpu.memory_space<vmem>>, vector<8x128xf32>,
    return
  }
}

</mosaic_0001>

<bundles_post_ra>
// kernel: fwd.1
= control target key start
LH: loop header
LB: loop body
LE: loop exit
PB: predicated region body
PF: predicated region fallthrough
CT: control target
= control target key end

     0   :  { %9 = vsyncpa [#allocation3], 0  ;;  %s658_s0 = inlined_call_operand.hbm [shape: f32[8,32], index: 0, kind: input, shape index: {}]   ;;  %s659_s1 = inlined_call_operand.hbm [shape: f32[128,512], index: 1, kind: input, shape index: {}]   ;;  %s660_s2 = inlined_call_operand.hbm [shape: f32[1,512], index: 2, kind: input, shape index: {}]   ;;  %s661_s3 = inlined_call_operand.vmem [shape: f32[8,128], index: 3, kind: input, shape index: {}]   ;;  %s662_s4 = inlined_call_operand.vmem [shape: f32[8,384], index: 4, kind: output, shape index: {}]  }
   0x1   :  { %10 = vsyncpa [#allocation5], 0  ;;  %s577_s15 = smov [#allocation4]   ;;  %s507_s19 = scalar_lea.hbm %s659_s1, 8192 }
   0x2   :  { %s26_s16 = sshll.u32 %s577_s15, 4  ;;  %p508_p0 = scmp.ne.s32.totalorder %s659_s1, %s507_s19  ;;  %s27_s16 = int_to_ptr.vmem [resolvable:$true] %s26_s16 }
   0x3   :  { %p511_p1 = scmp.lt.u32.totalorder %s507_s19, %s659_s1 }
   0x5   :  { %p513_p2 = pnand %p511_p1, %p508_p0 }
   0x7   :  { %516 = shalt.err (!%p513_p2)
}
   0x8   :  { %s517_s24 = scalar_lea.vmem %s27_s16, 8192  ;;  %p522_p4 = scmp.lt.s32.totalorder %s27_s16, %s27_s16 }
   0x9   :  { %p518_p3 = scmp.ne.s32.totalorder %s27_s16, %s517_s24  ;;  %p523_p5 = scmp.lt.s32.totalorder %s517_s24, %s517_s24 }
   0xb   :  { %p524_p6 = por %p523_p5, %p522_p4 }
   0xd   :  { %p525_p7 = pnand %p524_p6, %p518_p3 }
   0xf   :  { %528 = shalt.err (!%p525_p7)
}
  0x10   :  { %s578_s25 = smov 512   ;;  %s579_s26 = smov 32  }
  0x11   :  { %32 = dma.hbm_to_vmem [thread:$0]  %s659_s1, 8192, %s27_s16, [#allocation5], %s578_s25, %s578_s25, %s579_s26  }
  0x12   :  { %s580_s29 = smov [#allocation2]   ;;  %s581_s5 = smov [#allocation6]  }
  0x13   :  { %s17_s30 = sshll.u32 %s580_s29, 4  ;;  %s39_s6 = sshll.u32 %s581_s5, 4  ;;  %s18_s30 = int_to_ptr.vmem [resolvable:$true] %s17_s30  ;;  %s40_s6 = int_to_ptr.vmem [resolvable:$true] %s39_s6 }
  0x14   :  { %s529_s9 = scalar_lea.hbm %s658_s0, 128 }
  0x15   :  { %p530_p8 = scmp.ne.s32.totalorder %s658_s0, %s529_s9  ;;  %p533_p9 = scmp.lt.u32.totalorder %s529_s9, %s658_s0 }
  0x17   :  { %p535_p10 = pnand %p533_p9, %p530_p8 }
  0x19   :  { %538 = shalt.err (!%p535_p10)
}
  0x1a   :  { %s539_s1 = scalar_lea.vmem %s18_s30, 128  ;;  %p544_p12 = scmp.lt.s32.totalorder %s18_s30, %s18_s30 }
  0x1b   :  { %p540_p11 = scmp.ne.s32.totalorder %s18_s30, %s539_s1  ;;  %p545_p13 = scmp.lt.s32.totalorder %s539_s1, %s539_s1 }
  0x1d   :  { %p546_p0 = por %p545_p13, %p544_p12 }
  0x1f   :  { %p547_p1 = pnand %p546_p0, %p540_p11 }
  0x21   :  { %550 = shalt.err (!%p547_p1)
}
  0x22   :  { %20 = dma.hbm_to_vmem [thread:$0]  %s658_s0, 128, %s18_s30, [#allocation3]  }
  0x23   :  { %s551_s18 = scalar_lea.hbm %s660_s2, 64 }
  0x24   :  { %p552_p2 = scmp.ne.s32.totalorder %s660_s2, %s551_s18  ;;  %p555_p3 = scmp.lt.u32.totalorder %s551_s18, %s660_s2 }
  0x26   :  { %p557_p4 = pnand %p555_p3, %p552_p2 }
  0x28   :  { %560 = shalt.err (!%p557_p4)
}
  0x29   :  { %s561_s23 = scalar_lea.vmem %s40_s6, 64  ;;  %p566_p6 = scmp.lt.s32.totalorder %s40_s6, %s40_s6 }
  0x2a   :  { %p562_p5 = scmp.ne.s32.totalorder %s40_s6, %s561_s23  ;;  %p567_p7 = scmp.lt.s32.totalorder %s561_s23, %s561_s23 }
  0x2c   :  { %p568_p8 = por %p567_p7, %p566_p6 }
  0x2e   :  { %p569_p9 = pnand %p568_p8, %p562_p5 }
  0x30   :  { %572 = shalt.err (!%p569_p9)
}
  0x31   :  { %42 = dma.hbm_to_vmem [thread:$0]  %s660_s2, 64, %s40_s6, [#allocation5]  }
  0x32   :  { %573 = dma.done.wait [#allocation3], 128  }
  0x33   :  { %574 = vsyncadd [#allocation3], 4294967168 }
  0x34   :  { %575 = dma.done.wait [#allocation5], 8256  }
  0x35   :  { %576 = vsyncadd [#allocation5], 4294959040  ;;  %v582_v0 = vmov 0.0|0.0   ;;  %vm583_vm0 = vmmov 0   ;;  %v584_v1 = vmov 0.0   ;;  %v55_v2 = vld [vmem:[#allocation4] sm:$0xff] }
  0x36   :  { %435 = vmatprep.subr.bf16.mxu0 %v582_v0  ;;  %397 = vmatprep.mubr.msk.f32.mxu0 %vm583_vm0, %v584_v1  ;;  %v56_v3 = vld [vmem:[#allocation4 + $0x20] sm:$0xff]  ;;  %v141_v7 = vld [vmem:[#allocation4 + $0x8] sm:$0xff]  ;;  %v54_v16 = vld [vmem:[#allocation2] sm:$0xff]  ;;  %vm66_vm1 = vcmask 261120  }
  0x37   :  { %441 = vmatprep.subr.bf16.mxu1 %v582_v0  ;;  %432 = vmatprep.mubr.msk.f32.mxu1 %vm583_vm0, %v584_v1  ;;  %v57_v4 = vld [vmem:[#allocation4 + $0x40] sm:$0xff]  ;;  %v436_v5 = vpack.c.bf16 %v56_v3, %v55_v2  ;;  %v142_v8 = vld [vmem:[#allocation4 + $0x28] sm:$0xff]  ;;  %v235_v33 = vld [vmem:[#allocation4 + $0x18] sm:$0xff] }
  0x38   :  { %v58_v6 = vld [vmem:[#allocation4 + $0x60] sm:$0xff]  ;;  %v143_v9 = vld [vmem:[#allocation4 + $0x48] sm:$0xff]  ;;  %v442_v12 = vpack.c.bf16 %v142_v8, %v141_v7  ;;  %v237_v34 = vld [vmem:[#allocation4 + $0x38] sm:$0xff] }
  0x39   :  { %v144_v10 = vld [vmem:[#allocation4 + $0x68] sm:$0xff]  ;;  %437 = vmatpush3.bf16.msra.mxu0 %v436_v5  ;;  %v439_v11 = vpack.c.bf16 %v58_v6, %v57_v4  ;;  %v234_v35 = vld [vmem:[#allocation4 + $0x10] sm:$0xff]  ;;  %v465_v36 = vpack.c.bf16 %v237_v34, %v235_v33  ;;  %v239_v38 = vld [vmem:[#allocation4 + $0x58] sm:$0xff] }
  0x3a   :  { %438 = vmatprep.subr.bf16.mxu0 %v582_v0  ;;  %443 = vmatpush3.bf16.msra.mxu1 %v442_v12  ;;  %v445_v13 = vpack.c.bf16 %v144_v10, %v143_v9  ;;  %v145_v14 = vld [vmem:[#allocation4 + $0x88] sm:$0xff]  ;;  %v236_v37 = vld [vmem:[#allocation4 + $0x30] sm:$0xff]  ;;  %v241_v39 = vld [vmem:[#allocation4 + $0x78] sm:$0xff] }
  0x3b   :  { %444 = vmatprep.subr.bf16.mxu1 %v582_v0  ;;  %v146_v15 = vld [vmem:[#allocation4 + $0xa8] sm:$0xff]  ;;  %v467_v40 = vpack.c.bf16 %v236_v37, %v234_v35  ;;  %v469_v41 = vpack.c.bf16 %v241_v39, %v239_v38  ;;  %v238_v42 = vld [vmem:[#allocation4 + $0x50] sm:$0xff]  ;;  %v243_v44 = vld [vmem:[#allocation4 + $0x98] sm:$0xff] }
  0x3c   :  { %v448_v17 = vpack.c.bf16 %v146_v15, %v145_v14  ;;  %v147_v18 = vld [vmem:[#allocation4 + $0xc8] sm:$0xff]  ;;  %v240_v43 = vld [vmem:[#allocation4 + $0x70] sm:$0xff]  ;;  %v245_v45 = vld [vmem:[#allocation4 + $0xb8] sm:$0xff] }
  0x3d   :  { %440 = vmatpush3.bf16.msra.mxu0 %v439_v11  ;;  %v148_v19 = vld [vmem:[#allocation4 + $0xe8] sm:$0xff]  ;;  %v471_v46 = vpack.c.bf16 %v240_v43, %v238_v42  ;;  %v473_v47 = vpack.c.bf16 %v245_v45, %v243_v44  ;;  %v242_v48 = vld [vmem:[#allocation4 + $0x90] sm:$0xff]  ;;  %v247_v50 = vld [vmem:[#allocation4 + $0xd8] sm:$0xff] }
  0x3e   :  { %446 = vmatpush3.bf16.msra.mxu1 %v445_v13  ;;  %v451_v20 = vpack.c.bf16 %v148_v19, %v147_v18  ;;  %v149_v21 = vld [vmem:[#allocation4 + $0x108] sm:$0xff]  ;;  %466 = vmatprep.subr.bf16.mxu0 %v465_v36  ;;  %v244_v49 = vld [vmem:[#allocation4 + $0xb0] sm:$0xff]  ;;  %v249_v51 = vld [vmem:[#allocation4 + $0xf8] sm:$0xff] }
  0x3f   :  { %447 = vmatprep.subr.bf16.mxu1 %v582_v0  ;;  %v150_v22 = vld [vmem:[#allocation4 + $0x128] sm:$0xff]  ;;  %v475_v52 = vpack.c.bf16 %v244_v49, %v242_v48  ;;  %v477_v53 = vpack.c.bf16 %v249_v51, %v247_v50  ;;  %v246_v54 = vld [vmem:[#allocation4 + $0xd0] sm:$0xff]  ;;  %v251_v56 = vld [vmem:[#allocation4 + $0x118] sm:$0xff] }
  0x40   :  { %398 = vmatmul.mubr.msk.f32.vlgmr.msra.gmra.mrb[0].mxu0 %vm66_vm1, %v54_v16  ;;  %v454_v23 = vpack.c.bf16 %v150_v22, %v149_v21  ;;  %v151_v24 = vld [vmem:[#allocation4 + $0x148] sm:$0xff]  ;;  %v248_v55 = vld [vmem:[#allocation4 + $0xf0] sm:$0xff]  ;;  %v253_v57 = vld [vmem:[#allocation4 + $0x138] sm:$0xff] }
  0x41   :  { %342 = vmatprep.mubr.f32.mxu0 %v584_v1  ;;  %v152_v25 = vld [vmem:[#allocation4 + $0x168] sm:$0xff]  ;;  %468 = vmatpush1.bf16.msra.mxu0 %v467_v40  ;;  %v479_v58 = vpack.c.bf16 %v248_v55, %v246_v54  ;;  %v481_v59 = vpack.c.bf16 %v253_v57, %v251_v56  ;;  %v250_v60 = vld [vmem:[#allocation4 + $0x110] sm:$0xff]  ;;  %v255_v62 = vld [vmem:[#allocation4 + $0x158] sm:$0xff] }
  0x42   :  { %449 = vmatpush3.bf16.msra.mxu1 %v448_v17  ;;  %v457_v26 = vpack.c.bf16 %v152_v25, %v151_v24  ;;  %v153_v27 = vld [vmem:[#allocation4 + $0x188] sm:$0xff]  ;;  %470 = vmatprep.subr.bf16.mxu0 %v469_v41  ;;  %v252_v61 = vld [vmem:[#allocation4 + $0x130] sm:$0xff]  ;;  %v257_v63 = vld [vmem:[#allocation4 + $0x178] sm:$0xff] }
  0x43   :  { %450 = vmatprep.subr.bf16.mxu1 %v582_v0  ;;  %v154_v28 = vld [vmem:[#allocation4 + $0x1a8] sm:$0xff]  ;;  %v485_v1 = vpack.c.bf16 %v257_v63, %v255_v62  ;;  %v254_v2 = vld [vmem:[#allocation4 + $0x150] sm:$0xff]  ;;  %v259_v4 = vld [vmem:[#allocation4 + $0x198] sm:$0xff] }
  0x44   :  { %v460_v29 = vpack.c.bf16 %v154_v28, %v153_v27  ;;  %v155_v30 = vld [vmem:[#allocation4 + $0x1c8] sm:$0xff]  ;;  %v256_v3 = vld [vmem:[#allocation4 + $0x170] sm:$0xff]  ;;  %v261_v5 = vld [vmem:[#allocation4 + $0x1b8] sm:$0xff] }
  0x45   :  { %v156_v31 = vld [vmem:[#allocation4 + $0x1e8] sm:$0xff]  ;;  %472 = vmatpush1.bf16.msra.mxu0 %v471_v46  ;;  %v487_v6 = vpack.c.bf16 %v256_v3, %v254_v2  ;;  %v489_v7 = vpack.c.bf16 %v261_v5, %v259_v4  ;;  %v258_v8 = vld [vmem:[#allocation4 + $0x190] sm:$0xff]  ;;  %v263_v10 = vld [vmem:[#allocation4 + $0x1d8] sm:$0xff] }
  0x46   :  { %452 = vmatpush3.bf16.msra.mxu1 %v451_v20  ;;  %v463_v32 = vpack.c.bf16 %v156_v31, %v155_v30  ;;  %474 = vmatprep.subr.bf16.mxu0 %v473_v47  ;;  %v260_v9 = vld [vmem:[#allocation4 + $0x1b0] sm:$0xff]  ;;  %v265_v11 = vld [vmem:[#allocation4 + $0x1f8] sm:$0xff]  ;;  %v364_v14 = vld [vmem:[#allocation6] ss:$0 sm:$0xff] }
  0x47   :  { %453 = vmatprep.subr.bf16.mxu1 %v582_v0  ;;  %v491_v12 = vpack.c.bf16 %v260_v9, %v258_v8  ;;  %v493_v13 = vpack.c.bf16 %v265_v11, %v263_v10  ;;  %v262_v19 = vld [vmem:[#allocation4 + $0x1d0] sm:$0xff]  ;;  %v366_v22 = vld [vmem:[#allocation6 + $0x1] ss:$0 sm:$0xff]  ;;  %v349_v39 = vld [vmem:[%s661_s3] sm:$0xff] }
  0x48   :  { %v264_v20 = vld [vmem:[#allocation4 + $0x1f0] sm:$0xff] }
  0x49   :  { %476 = vmatpush1.bf16.msra.mxu0 %v475_v52  ;;  %v495_v21 = vpack.c.bf16 %v264_v20, %v262_v19 }
  0x4a   :  { %455 = vmatpush3.bf16.msra.mxu1 %v454_v23  ;;  %478 = vmatprep.subr.bf16.mxu0 %v477_v53 }
  0x4b   :  { %456 = vmatprep.subr.bf16.mxu1 %v582_v0 }
  0x4d   :  { %480 = vmatpush1.bf16.msra.mxu0 %v479_v58 }
  0x4e   :  { %458 = vmatpush3.bf16.msra.mxu1 %v457_v26  ;;  %482 = vmatprep.subr.bf16.mxu0 %v481_v59  ;;  %v268_v26 = vlaneseq }
  0x4f   :  { %459 = vmatprep.subr.bf16.mxu1 %v582_v0 }
  0x50   :  { %v269_v27 = vshrl.u32 %v268_v26, 7 }
  0x52   :  { %461 = vmatpush3.bf16.msra.mxu1 %v460_v29  ;;  %v270_v28 = vsub.s32 0, %v269_v27  ;;  %v266_v29 = vld [vmem:[#allocation6 + $0x2] sm:$0x3]  ;;  %v274_v30 = vsub.s32 1, %v269_v27 }
  0x53   :  { %462 = vmatprep.subr.bf16.mxu1 %v582_v0  ;;  %v483_v0 = vpack.c.bf16 %v252_v61, %v250_v60 }
  0x54   :  { %v271_v31 = vrot.slane %v266_v29, %v270_v28 }
  0x55   :  { %484 = vmatpush1.bf16.msra.mxu0 %v483_v0 }
  0x56   :  { %464 = vmatpush3.bf16.msra.mxu1 %v463_v32  ;;  %486 = vmatprep.subr.bf16.mxu0 %v485_v1  ;;  %v275_v32 = vrot.slane %v266_v29, %v274_v30 }
  0x59   :  { %488 = vmatpush1.bf16.msra.mxu0 %v487_v6 }
  0x5a   :  { %490 = vmatprep.subr.bf16.mxu0 %v489_v7 }
  0x5d   :  { %492 = vmatpush1.bf16.msra.mxu0 %v491_v12 }
  0x5e   :  { %494 = vmatprep.subr.bf16.mxu0 %v493_v13 }
  0x61   :  { %496 = vmatpush1.bf16.msra.mxu0 %v495_v21 }
 0x113   :  { %v136_v15 = vpop.f32.mrb[0].mxu0 }
 0x114   :  { %v137_v16 = vadd.f32 %v364_v14, %v136_v15  ;;  %v399_v17 = vpop.f32.mrb[1].mxu0 }
 0x116   :  { %v140_v18 = vmax.f32 %v137_v16, 0.0 }
 0x118   :  { %433 = vmatmul.mubr.f32.vlgmr.msra.gmra.mrb[0].mxu1 %v140_v18 }
 0x1eb   :  { %v230_v23 = vpop.f32.mrb[0].mxu1 }
 0x1ec   :  { %v231_v24 = vadd.f32 %v366_v22, %v230_v23  ;;  %v434_v25 = vpop.f32.mrb[1].mxu1 }
 0x1ee   :  { %343 = vmatmul.mubr.f32.vlgmr.msra.gmra.mrb[2].mxu0 %v231_v24 }
 0x2c1   :  { %v344_v33 = vpop.f32.mrb[2].mxu0 }
 0x2c2   :  { %v345_v34 = vadd.f32 %v344_v33, %v271_v31  ;;  %v346_v35 = vpop.f32.mrb[3].mxu0 }
 0x2c3   :  { %v347_v36 = vadd.f32 %v346_v35, %v275_v32 }
 0x2c4   :  { %356 = vst [vmem:[%s662_s4 + $0x8] sm:$0xff] %v345_v34 }
 0x2c5   :  { %v350_v37 = vmul.f32 0.5, %v347_v36  ;;  %357 = vst [vmem:[%s662_s4 + $0x10] sm:$0xff] %v347_v36 }
 0x2c7   :  { %v351_v38 = vmul.f32 1.442695, %v350_v37 }
 0x2c9   :  { %505 = vpow2.f32 %v351_v38 }
 0x2d3   :  { %v506_v40 = vpop.eup %505 }
 0x2d4   :  { %v353_v41 = vmul.f32 %v506_v40, %v349_v39 }
 0x2d6   :  { %v354_v42 = vadd.f32 %v353_v41, %v345_v34 }
 0x2d8   :  { %355 = vst [vmem:[%s662_s4] sm:$0xff] %v354_v42 }
 0x2d9   :  { %362 = vsyncpa [#allocation3], 1 }
 0x2da   :  { %363 = vsyncpa [#allocation5], 1 }

</bundles_post_ra>
